<compile_context>
chip_gen: v5e
topology: v5e:2x2
jax: 0.10.0
libtpu: 0.0.40
codegen_flags: <defaults>
</compile_context>

<pallas_src>
import jax
import jax.numpy as jnp
from jax.experimental import pallas as pl
from jax.experimental.pallas import tpu as pltpu


def _round_up(x, m):
    return -(-x // m) * m


def _floor8(x):
    return (x // 8) * 8


# ---------------------------------------------------------------------------
# Per-generation VMEM policy (v5e/v6e: 128 MiB physical, v7x: 64 MiB).
# ---------------------------------------------------------------------------
def _vmem_capacity_bytes():
    try:
        return int(pltpu.get_tpu_info().vmem_capacity_bytes)
    except Exception:
        return 64 * 1024 * 1024                  # conservative default (v7x)


_VMEM_CAP = _vmem_capacity_bytes()
# ~3/4 of physical: 48 MiB on v7x, 96 MiB on v5e/v6e.
_VMEM_LIMIT = min(_VMEM_CAP * 3 // 4, 96 * 1024 * 1024)
# Conservative per-step working set: 2x bf16 input tile (double buffer)
# + <=2x tile of transient f32 reduce temp + f32 accumulator scratch
# + 2x bf16 emb output buffer  ~< 6x input tile  -> keep under _VMEM_LIMIT.
_IN_TILE_BYTES = max(2 * 1024 * 1024, min(_VMEM_LIMIT // 6, 16 * 1024 * 1024))


# ---------------------------------------------------------------------------
# Question embedder head: tiny (rows == batch) -> plain JAX per perf review
# (XLA fuses it; no pallas_call fixed overhead on the serial path that feeds
# the chunk kernel).
# ---------------------------------------------------------------------------
def pool_normalize_jax(tokens):
    pooled = jnp.sum(tokens, axis=-2, dtype=jnp.float32)   # no 1/S: cancels in L2
    sq = jnp.sum(pooled * pooled, axis=-1, keepdims=True)
    return pooled * jax.lax.rsqrt(sq + 1e-12)


# ---------------------------------------------------------------------------
# Fused kernel: chunk pooling + L2 normalization + cosine similarity.
#   chunk_tokens : [B, N, S, D]  (streamed bf16)
#   q_emb        : [B, 1, D]     unit-norm question embedding (f32, tiny)
#   outputs      : chunk_emb [B, N, D] (bf16), sims [B, N, 1] (f32)
# Grid: (batch, chunk-tiles, seq-tiles).  The seq axis is a reduction
# ("arbitrary") accumulated into an f32 VMEM scratch; batch / chunk-tile axes
# are "parallel" (megacore).  Similarity is a VPU multiply + lane reduce.
# ---------------------------------------------------------------------------
def _chunk_pool_sim_kernel(chunk_ref, q_ref, emb_ref, sim_ref, acc_ref):
    k = pl.program_id(2)

    @pl.when(k == 0)
    def _():
        acc_ref[...] = jnp.zeros_like(acc_ref)

    # Partial pooling sum over this S-tile; bf16 tile reduced with an f32
    # accumulator dtype (no full-tile f32 copy kept live across steps).
    acc_ref[...] += jnp.sum(chunk_ref[...], axis=2, dtype=jnp.float32)

    @pl.when(k == pl.num_programs(2) - 1)
    def _():
        pooled = acc_ref[...]                                  # (1, TN, D) f32
        sq = jnp.sum(pooled * pooled, axis=-1, keepdims=True)  # (1, TN, 1)
        emb = pooled * jax.lax.rsqrt(sq + 1e-12)               # EUP rsqrt
        emb_ref[...] = emb.astype(emb_ref.dtype)               # bf16 writeback
        # cosine similarity against the unit-norm question embedding
        sim_ref[...] = jnp.sum(emb * q_ref[...], axis=-1, keepdims=True)


def _chunk_tiles(b, n, s, d, in_tile_bytes):
    item = 2                                       # bf16 streaming
    s8 = _round_up(s, 8)
    if 8 * s8 * d * item <= in_tile_bytes:         # >= 8 full chunk rows fit
        ts = s8
    else:                                          # very long S*D: tile S too
        ts = max(8, _floor8(in_tile_bytes // (8 * d * item)))
    s_pad = _round_up(s8, ts)
    tn = max(8, _floor8(in_tile_bytes // (ts * d * item)))
    tn = min(tn, _round_up(n, 8))
    n_pad = _round_up(n, tn)
    # v7x has 2 TensorCores: guarantee the grid has >= 2 steps to shard.
    if b * (n_pad // tn) * (s_pad // ts) < 2 and n_pad >= 16:
        tn = max(8, _round_up(n_pad // 2, 8))
        n_pad = _round_up(n, tn)
    return tn, n_pad, ts, s_pad


def chunk_pool_similarity(chunk_tokens, q_emb, *, in_tile_bytes=_IN_TILE_BYTES):
    b, n, s, d = chunk_tokens.shape
    tn, n_pad, ts, s_pad = _chunk_tiles(b, n, s, d, in_tile_bytes)
    if (n_pad, s_pad) != (n, s):
        chunk_tokens = jnp.pad(
            chunk_tokens, ((0, 0), (0, n_pad - n), (0, s_pad - s), (0, 0)))
    q3 = q_emb[:, None, :].astype(jnp.float32)                 # [B, 1, D]

    emb, sims = pl.pallas_call(
        _chunk_pool_sim_kernel,
        out_shape=(jax.ShapeDtypeStruct((b, n_pad, d), jnp.bfloat16),
                   jax.ShapeDtypeStruct((b, n_pad, 1), jnp.float32)),
        grid=(b, n_pad // tn, s_pad // ts),
        in_specs=[
            # TODO(synk): add pipeline_mode=pl.Buffered(3) here if an xprof
            # trace shows exposed DMA at grid-step boundaries.
            pl.BlockSpec((1, tn, ts, d), lambda i, j, k: (i, j, k, 0)),
            pl.BlockSpec((1, 1, d), lambda i, j, k: (i, 0, 0)),
        ],
        out_specs=(
            pl.BlockSpec((1, tn, d), lambda i, j, k: (i, j, 0)),   # lane-dense
            pl.BlockSpec((1, tn, 1), lambda i, j, k: (i, j, 0)),   # 4 B/chunk
        ),
        scratch_shapes=[pltpu.VMEM((1, tn, d), jnp.float32)],
        compiler_params=pltpu.CompilerParams(
            dimension_semantics=("parallel", "parallel", "arbitrary"),
            vmem_limit_bytes=_VMEM_LIMIT),
    )(chunk_tokens, q3)

    return emb[:, :n, :], sims[:, :n, 0]


# ---------------------------------------------------------------------------
# NotAnswerableClassifier MLP: sigmoid(relu([ctx, ans] W1 + b1) . w2 + b2)
# Concat is fused by splitting W1; batch padded to 8 rows; the N=1 second layer
# is a VPU reduction against a lane-dense [1, HID] row (no M=1 MXU matmul).
# ---------------------------------------------------------------------------
def _nac_mlp_kernel(x1_ref, x2_ref, w1a_ref, w1b_ref, b1_ref, w2_ref, b2_ref,
                    o_ref):
    h = (jnp.dot(x1_ref[...], w1a_ref[...], preferred_element_type=jnp.float32)
         + jnp.dot(x2_ref[...], w1b_ref[...], preferred_element_type=jnp.float32)
         + b1_ref[...])
    h = jnp.maximum(h, 0.0)
    logit = jnp.sum(h * w2_ref[...], axis=-1, keepdims=True) + b2_ref[...]
    o_ref[...] = jax.nn.sigmoid(logit)


def nac_mlp(ctx_emb, ans_emb, params):
    bsz, d = ctx_emb.shape
    hid = params['w1'].shape[1]
    b_pad = _round_up(max(bsz, 8), 8)
    if b_pad != bsz:
        ctx_emb = jnp.pad(ctx_emb, ((0, b_pad - bsz), (0, 0)))
        ans_emb = jnp.pad(ans_emb, ((0, b_pad - bsz), (0, 0)))
    w1a, w1b = params['w1'][:d, :], params['w1'][d:, :]
    out = pl.pallas_call(
        _nac_mlp_kernel,
        out_shape=jax.ShapeDtypeStruct((b_pad, 1), jnp.float32),
        grid=(1,),
        in_specs=[
            pl.BlockSpec((b_pad, d), lambda i: (0, 0)),
            pl.BlockSpec((b_pad, d), lambda i: (0, 0)),
            pl.BlockSpec((d, hid), lambda i: (0, 0)),
            pl.BlockSpec((d, hid), lambda i: (0, 0)),
            pl.BlockSpec((1, hid), lambda i: (0, 0)),
            pl.BlockSpec((1, hid), lambda i: (0, 0)),
            pl.BlockSpec((1, 1), lambda i: (0, 0)),
        ],
        out_specs=pl.BlockSpec((b_pad, 1), lambda i: (0, 0)),
        compiler_params=pltpu.CompilerParams(vmem_limit_bytes=_VMEM_LIMIT),
    )(ctx_emb.astype(jnp.float32), ans_emb.astype(jnp.float32),
      w1a, w1b, params['b1'], params['w2'], params['b2'])
    return out[:bsz]


# ---------------------------------------------------------------------------
# Wrapper reproducing the RAG retrieval + NAC portion of RAGVT5.forward
# ---------------------------------------------------------------------------
def ragvt5_retrieval_forward(chunk_tokens, question_tokens, params, top_k=4):
    """
    chunk_tokens    : [B, N, S, D] token embeddings of text chunks (chunker output)
    question_tokens : [B, S, D]    token embeddings of the question
    returns (similarities [B, N], top_k_indices [B, k], nac_probs [B, 1])
    """
    # Stream tokens as bf16 (pooling is HBM-bandwidth bound); math stays f32.
    chunk_tokens = chunk_tokens.astype(jnp.bfloat16)
    question_tokens = question_tokens.astype(jnp.bfloat16)

    # Embedder (BiEncoder.forward): question pooling + L2 norm (plain JAX).
    q_emb = pool_normalize_jax(question_tokens)                       # [B, D] f32

    # Embedder.batch_forward + Retriever.retrieve scoring, fused (Pallas).
    chunk_emb, sims = chunk_pool_similarity(chunk_tokens, q_emb)      # bf16 / f32

    # Top-k selection + gather stay as JAX glue (ragged python lists in the
    # original module).
    _, top_idx = jax.lax.top_k(sims, top_k)
    gathered = jnp.take_along_axis(chunk_emb, top_idx[:, :, None], axis=1)
    input_embeds = jnp.mean(gathered.astype(jnp.float32), axis=1)     # [B, D]
    # TODO(synk): answer_embeds should come from generator.process_text(pred);
    # use the question embedding as its deterministic placeholder.
    answer_embeds = q_emb                                             # [B, D]

    probs = nac_mlp(input_embeds, answer_embeds, params)              # [B, 1]
    return sims, top_idx, probs


# ---------------------------------------------------------------------------
# Pure-JAX reference for correctness checking (same bf16 streaming dtype,
# same bf16 chunk-embedding writeback).
# ---------------------------------------------------------------------------
def reference(chunk_tokens, question_tokens, params, top_k=4):
    b, n, s, d = chunk_tokens.shape
    ct = chunk_tokens.astype(jnp.bfloat16).astype(jnp.float32)
    qt = question_tokens.astype(jnp.bfloat16).astype(jnp.float32)

    def pool(x):
        p = jnp.sum(x, axis=-2)                     # no 1/S: cancels in L2 norm
        return p * jax.lax.rsqrt(jnp.sum(p * p, -1, keepdims=True) + 1e-12)

    c = pool(ct.reshape(b * n, s, d)).reshape(b, n, d)
    q = pool(qt)
    sims = jnp.einsum('bd,bnd->bn', q, c)
    c_bf16 = c.astype(jnp.bfloat16)                 # kernel stores emb as bf16
    _, idx = jax.lax.top_k(sims, top_k)
    g = jnp.take_along_axis(c_bf16, idx[:, :, None], axis=1)
    g = jnp.mean(g.astype(jnp.float32), axis=1)
    x = jnp.concatenate([g, q], axis=-1)
    h = jnp.maximum(x @ params['w1'] + params['b1'], 0.0)
    p = jax.nn.sigmoid(jnp.sum(h * params['w2'], -1, keepdims=True) + params['b2'])
    return sims, idx, p


if __name__ == "__main__":
    key = jax.random.PRNGKey(0)
    B, N, S, D, HID, K = 2, 16, 8, 128, 128, 4

    k1, k2, k3, k4 = jax.random.split(key, 4)
    chunk_tokens = jax.random.normal(k1, (B, N, S, D), dtype=jnp.float32)
    question_tokens = jax.random.normal(k2, (B, S, D), dtype=jnp.float32)

    # Deterministic NAC MLP parameters (module sets emb_dim=768; scaled down).
    # w2 is stored as a lane-dense [1, HID] row (second layer is a reduction).
    params = {
        'w1': jax.random.normal(k3, (2 * D, HID), dtype=jnp.float32) * 0.02,
        'b1': jnp.zeros((1, HID), dtype=jnp.float32),
        'w2': jax.random.normal(k4, (1, HID), dtype=jnp.float32) * 0.02,
        'b2': jnp.zeros((1, 1), dtype=jnp.float32),
    }

    sims, top_idx, probs = ragvt5_retrieval_forward(
        chunk_tokens, question_tokens, params, top_k=K)
    jax.block_until_ready((sims, top_idx, probs))

    r_sims, r_idx, r_probs = reference(chunk_tokens, question_tokens, params,
                                       top_k=K)
    assert jnp.allclose(sims, r_sims, atol=1e-3), "similarity mismatch"
    # Compare top-k by similarity VALUES (near-ties can legally reorder indices
    # between the two accumulation orders).
    topk_vals = jnp.take_along_axis(sims, top_idx, axis=1)
    r_topk_vals = jnp.take_along_axis(r_sims, r_idx, axis=1)
    assert jnp.allclose(topk_vals, r_topk_vals, atol=1e-3), "top-k value mismatch"
    assert jnp.allclose(probs, r_probs, atol=1e-3), "NAC prob mismatch"

    print("KERNEL_OK")
</pallas_src>

<mosaic_0001>
module attributes {stable_mosaic.version = 11 : i64} {
  func.func @_chunk_pool_sim_kernel(%arg0: i32, %arg1: i32, %arg2: i32, %arg3: memref<1x16x8x128xbf16, #tpu.memory_space<vmem>>, %arg4: memref<1x1x128xf32, #tpu.memory_space<vmem>>, %arg5: memref<1x16x128xbf16, #tpu.memory_space<vmem>>, %arg6: memref<1x16x1xf32, #tpu.memory_space<vmem>>, %arg7: memref<1x16x128xf32, #tpu.memory_space<vmem>>) attributes {dimension_semantics = [#tpu.dimension_semantics<parallel>, #tpu.dimension_semantics<parallel>, #tpu.dimension_semantics<arbitrary>], iteration_bounds = array<i64: 2, 1, 1>, scalar_prefetch = 0 : i64, scratch_operands = 1 : i64, tpu.core_type = #tpu.core_type<tc>, window_params = [{transform_indices = @transform_0, window_bounds = array<i64: 1, 16, 8, 128>}, {transform_indices = @transform_1, window_bounds = array<i64: 1, 1, 128>}, {transform_indices = @transform_2, window_bounds = array<i64: 1, 16, 128>}, {transform_indices = @transform_3, window_bounds = array<i64: 1, 16, 1>}]} {
    %c0_i32 = arith.constant 0 : i32
    %0 = arith.cmpi eq, %arg2, %c0_i32 : i32
    %1 = arith.extui %0 : i1 to i32
    %c0_i32_0 = arith.constant 0 : i32
    %2 = arith.cmpi ne, %1, %c0_i32_0 : i32
    scf.if %2 {
      %cst_12 = arith.constant 0.000000e+00 : f32
      %12 = vector.broadcast %cst_12 : f32 to vector<1x16x128xf32>
      %c0_13 = arith.constant 0 : index
      %c0_14 = arith.constant 0 : index
      %c0_15 = arith.constant 0 : index
      %13 = vector.load %arg7[%c0_13, %c0_14, %c0_15] : memref<1x16x128xf32, #tpu.memory_space<vmem>>, vector<1x16x128xf32>
      tpu.vector_store %arg7[%c0_13, %c0_14, %c0_15], %12 {strides = array<i32>} : memref<1x16x128xf32, #tpu.memory_space<vmem>>, vector<1x16x128xf32>,
    } else {
    }
    %c0 = arith.constant 0 : index
    %c0_1 = arith.constant 0 : index
    %c0_2 = arith.constant 0 : index
    %3 = vector.load %arg7[%c0, %c0_1, %c0_2] : memref<1x16x128xf32, #tpu.memory_space<vmem>>, vector<1x16x128xf32>
    %c0_3 = arith.constant 0 : index
    %c0_4 = arith.constant 0 : index
    %c0_5 = arith.constant 0 : index
    %c0_6 = arith.constant 0 : index
    %4 = vector.load %arg3[%c0_3, %c0_4, %c0_5, %c0_6] : memref<1x16x8x128xbf16, #tpu.memory_space<vmem>>, vector<1x16x8x128xbf16>
    %5 = arith.extf %4 : vector<1x16x8x128xbf16> to vector<1x16x8x128xf32>
    %cst = arith.constant dense<0.000000e+00> : vector<1x16x128xf32>
    %6 = vector.multi_reduction <add>, %5, %cst [2] : vector<1x16x8x128xf32> to vector<1x16x128xf32>
    %7 = arith.addf %3, %6 : vector<1x16x128xf32>
    %c0_7 = arith.constant 0 : index
    %c0_8 = arith.constant 0 : index
    %c0_9 = arith.constant 0 : index
    %8 = vector.load %arg7[%c0_7, %c0_8, %c0_9] : memref<1x16x128xf32, #tpu.memory_space<vmem>>, vector<1x16x128xf32>
    tpu.vector_store %arg7[%c0_7, %c0_8, %c0_9], %7 {strides = array<i32>} : memref<1x16x128xf32, #tpu.memory_space<vmem>>, vector<1x16x128xf32>,
    %c0_i32_10 = arith.constant 0 : i32
    %9 = arith.cmpi eq, %arg2, %c0_i32_10 : i32
    %10 = arith.extui %9 : i1 to i32
    %c0_i32_11 = arith.constant 0 : i32
    %11 = arith.cmpi ne, %10, %c0_i32_11 : i32
    scf.if %11 {
      %c0_12 = arith.constant 0 : index
      %c0_13 = arith.constant 0 : index
      %c0_14 = arith.constant 0 : index
      %12 = vector.load %arg7[%c0_12, %c0_13, %c0_14] : memref<1x16x128xf32, #tpu.memory_space<vmem>>, vector<1x16x128xf32>
      %13 = arith.mulf %12, %12 : vector<1x16x128xf32>
      %cst_15 = arith.constant dense<0.000000e+00> : vector<1x16xf32>
      %14 = vector.multi_reduction <add>, %13, %cst_15 [2] : vector<1x16x128xf32> to vector<1x16xf32>
      %15 = vector.shape_cast %14 : vector<1x16xf32> to vector<1x16x1xf32>
      %cst_16 = arith.constant 9.99999996E-13 : f32
      %16 = vector.broadcast %cst_16 : f32 to vector<1x16x1xf32>
      %17 = arith.addf %15, %16 : vector<1x16x1xf32>
      %18 = math.rsqrt %17 : vector<1x16x1xf32>
      %19 = vector.broadcast %18 : vector<1x16x1xf32> to vector<1x16x128xf32>
      %20 = arith.mulf %12, %19 : vector<1x16x128xf32>
      %21 = arith.truncf %20 : vector<1x16x128xf32> to vector<1x16x128xbf16>
      %c0_17 = arith.constant 0 : index
      %c0_18 = arith.constant 0 : index
      %c0_19 = arith.constant 0 : index
      %22 = vector.load %arg5[%c0_17, %c0_18, %c0_19] : memref<1x16x128xbf16, #tpu.memory_space<vmem>>, vector<1x16x128xbf16>
      tpu.vector_store %arg5[%c0_17, %c0_18, %c0_19], %21 {strides = array<i32>} : memref<1x16x128xbf16, #tpu.memory_space<vmem>>, vector<1x16x128xbf16>,
      %c0_20 = arith.constant 0 : index
      %c0_21 = arith.constant 0 : index
      %c0_22 = arith.constant 0 : index
      %23 = vector.load %arg4[%c0_20, %c0_21, %c0_22] : memref<1x1x128xf32, #tpu.memory_space<vmem>>, vector<1x1x128xf32>
      %24 = vector.broadcast %23 : vector<1x1x128xf32> to vector<1x16x128xf32>
      %25 = arith.mulf %20, %24 : vector<1x16x128xf32>
      %cst_23 = arith.constant dense<0.000000e+00> : vector<1x16xf32>
      %26 = vector.multi_reduction <add>, %25, %cst_23 [2] : vector<1x16x128xf32> to vector<1x16xf32>
      %27 = vector.shape_cast %26 : vector<1x16xf32> to vector<1x16x1xf32>
      %c0_24 = arith.constant 0 : index
      %c0_25 = arith.constant 0 : index
      %c0_26 = arith.constant 0 : index
      %28 = vector.load %arg6[%c0_24, %c0_25, %c0_26] : memref<1x16x1xf32, #tpu.memory_space<vmem>>, vector<1x16x1xf32>
      tpu.vector_store %arg6[%c0_24, %c0_25, %c0_26], %27 {strides = array<i32>} : memref<1x16x1xf32, #tpu.memory_space<vmem>>, vector<1x16x1xf32>,
    } else {
    }
    return
  }
  func.func @transform_0(%arg0: i32, %arg1: i32, %arg2: i32) -> (i32, i32, i32, i32) {
    %c0_i32 = arith.constant 0 : i32
    %c0_i32_0 = arith.constant 0 : i32
    return %arg0, %arg1, %arg2, %c0_i32 : i32, i32, i32, i32
  }
  func.func @transform_1(%arg0: i32, %arg1: i32, %arg2: i32) -> (i32, i32, i32) {
    %c0_i32 = arith.constant 0 : i32
    %c0_i32_0 = arith.constant 0 : i32
    %c0_i32_1 = arith.constant 0 : i32
    return %arg0, %c0_i32, %c0_i32_0 : i32, i32, i32
  }
  func.func @transform_2(%arg0: i32, %arg1: i32, %arg2: i32) -> (i32, i32, i32) {
    %c0_i32 = arith.constant 0 : i32
    %c0_i32_0 = arith.constant 0 : i32
    return %arg0, %arg1, %c0_i32 : i32, i32, i32
  }
  func.func @transform_3(%arg0: i32, %arg1: i32, %arg2: i32) -> (i32, i32, i32) {
    %c0_i32 = arith.constant 0 : i32
    %c0_i32_0 = arith.constant 0 : i32
    return %arg0, %arg1, %c0_i32 : i32, i32, i32
  }
}

</mosaic_0001>

<bundles_post_ra>
// kernel: tpu_custom_call.1
= control target key start
LH: loop header
LB: loop body
LE: loop exit
PB: predicated region body
PF: predicated region fallthrough
CT: control target
= control target key end

     0   :  { %9 = vsyncpa [#allocation4], 0  ;;  %s1176_s0 = inlined_call_operand.hbm [shape: bf16[2,16,8,128], index: 0, kind: input, shape index: {}]   ;;  %s1177_s1 = inlined_call_operand.hbm [shape: f32[2,1,128], index: 1, kind: input, shape index: {}]   ;;  %s1178_s2 = inlined_call_operand.hbm [shape: bf16[2,16,128], index: 2, kind: output, shape index: {0}]   ;;  %s1179_s3 = inlined_call_operand.vmem [shape: f32[2,16,1], index: 3, kind: output, shape index: {1}]  }
   0x1   :  { %11 = vsyncpa [#allocation4 + $0x1], 0 }
   0x2   :  { %12 = vsyncpa [#allocation7], 0 }
   0x3   :  { %14 = vsyncpa [#allocation7 + $0x1], 0 }
   0x4   :  { %15 = vsyncpa [#allocation5], 0 }
   0x5   :  { %17 = vsyncpa [#allocation5 + $0x1], 0  ;;  %s1001_s12 = smov 0   ;;  %s1003_s13 = smov 0  }
   0x6   :  { %s1005_s14 = smov 0   ;;  %s1007_s15 = smov 0  }
   0x7   :  { %s1009_s16 = smov 0   ;;  %s1011_s17 = smov 0  }
   0x8 LB: > { %s689_s18 = sadd.s32 4294967295, %s975_s17   ;;  %s690_s19 = sadd.s32 4294967294, %s975_s17   ;;  %s975_s17 = sphi %s1011_s17, %s23_s17   ;;  %s971_s16 = sphi %s1009_s16, %s1189_s16   ;;  %s967_s15 = sphi %s1007_s15, %s1188_s15   ;;  %s963_s14 = sphi %s1005_s14, %s1187_s14   ;;  %s959_s13 = sphi %s1003_s13, %s1186_s13   ;;  %s955_s12 = sphi %s1001_s12, %s1185_s12  }
   0x9   : > { %s42_s20 = sadd.s32 1, %s971_s16  ;;  %s53_s21 = sadd.s32 1, %s963_s14 }
   0xa   : > { %p44_p0 = scmp.ge.s32.totalorder %s42_s20, 2  ;;  %p60_p1 = scmp.ne.s32.totalorder %s963_s14, %s959_s13 }
   0xb   : > { %p61_p2 = scmp.eq.s32.totalorder %s975_s17, 0  ;;  %p66_p3 = scmp.ne.s32.totalorder %s959_s13, %s955_s12 }
   0xc   : > { %s1191_s20 = smov (%p44_p0, %s42_s20), 0  ;;  %p67_p5 = scmp.eq.s32.totalorder %s689_s18, 0 }
   0xd   : > { %p1042_p4 = por %p61_p2, %p60_p1  ;;  %s46_s23 = ssub.s32 %s971_s16, %s1191_s20 }
   0xe   : > { %p118_p6 = scmp.eq.s32.totalorder %s689_s18, 1  ;;  %p51_p7 = scmp.eq.s32.totalorder %s46_s23, 0 }
   0xf   : > { %p1048_p8 = por %p67_p5, %p66_p3  ;;  %p124_p10 = scmp.eq.s32.totalorder %s690_s19, 1 }
  0x10   : > { %p1052_p9 = por %p118_p6, %p60_p1  ;;  %p692_p12 = scmp.ge.s32.totalorder %s975_s17, 2 }
  0x11   : > { %s1057_s26 = scalar_select %p51_p7, %s963_s14, %s53_s21  }
  0x12   : > { %p1059_p11 = por %p124_p10, %p66_p3  ;;  %p770_p13 = scmp.lt.s32.totalorder %s975_s17, 2 }
  0x13   : > { %s172_s28 = sand.u32 1, %s963_s14   ;;  %s706_s30 = sshll.u32 %s971_s16, 6 }
  0x14   : > { %s693_s29 = sshll.u32 %s172_s28, 6  ;;  %s184_s6 = scalar_lea.hbm %s1176_s0, %s706_s30 }
  0x15   : > { %s176_s7 = scalar_lea.vmem [#allocation3], %s693_s29  ;;  %s185_s9 = sshll.u32 %s184_s6, 4  ;;  %s186_s9 = int_to_ptr.hbm [resolvable:$true] %s185_s9 }
  0x16   : > { %s187_s8 = sshll.u32 %s176_s7, 4  ;;  %p1072_p0 = pnand %p770_p13, %p1042_p4  ;;  %s188_s8 = int_to_ptr.vmem [resolvable:$true] %s187_s8 }
  0x17   : > { %p696_p1 = scmp.ge.s32.totalorder %s975_s17, 1  ;;  %s173_s11 = scalar_lea.sflag [#allocation4], %s172_s28 }
  0x18   : > { %s977_s18 = smov 64   ;;  %s978_s19 = smov 4  }
  0x19   : > { %762 = dma.hbm_to_vmem [thread:$0]  (!%p1072_p0), %s186_s9, 1024, %s188_s8, %s173_s11, %s977_s18, %s977_s18, %s978_s19  }
  0x1a   : > { %p212_p2 = scmp.lt.s32.totalorder %s975_s17, 3  ;;  %s203_s29 = scalar_lea.hbm %s1177_s1, %s971_s16 }
  0x1b   : > { %s205_s30 = sshll.u32 %s203_s29, 4  ;;  %s200_s22 = scalar_lea.vmem [#allocation6], %s172_s28  ;;  %s206_s30 = int_to_ptr.hbm [resolvable:$true] %s205_s30 }
  0x1c   : > { %p213_p3 = pnand %p696_p1, %p212_p2  ;;  %s207_s4 = sshll.u32 %s200_s22, 4  ;;  %s208_s4 = int_to_ptr.vmem [resolvable:$true] %s207_s4 }
  0x1d   : > { %s198_s5 = scalar_lea.sflag [#allocation7], %s172_s28  ;;  %s1087_s6 = sand.u32 (!%p213_p3), 1, %s959_s13  }
  0x1e   : > { %765 = dma.hbm_to_vmem [thread:$0]  (!%p1072_p0), %s206_s30, 16, %s208_s4, %s198_s5  }
  0x1f   : > { %216 = sbr.rel (%p213_p3) target bundleno = 336 (0x150), region = 28  ;;  %s697_s7 = sshll.u32 (!%p213_p3), %s1087_s6, 6 }
  0x20   : > { %s219_s8 = scalar_lea.sflag (!%p213_p3), [#allocation4], %s1087_s6  ;;  %s1091_s9 = scalar_lea.vmem (!%p213_p3), [#allocation3], %s697_s7 }
  0x24   : > { %942 = dma.done.wait (%p1048_p8), %s219_s8, 1024  }
  0x25   : > { %944 = vsyncadd (%p1048_p8), %s219_s8, 4294966272  ;;  %s229_s28 = scalar_lea.sflag [#allocation7], %s1087_s6  ;;  %s231_s10 = scalar_lea.vmem [#allocation6], %s1087_s6 }
  0x26   : > { %946 = dma.done.wait (%p1048_p8), %s229_s28, 16  }
  0x27   : > { %948 = vsyncadd (%p1048_p8), %s229_s28, 4294967280  ;;  %v710_v0 = vld [vmem:[%s1091_s9] sm:$0xff]   ;;  %v746_v1 = vld [vmem:[%s1091_s9 + $0x8] sm:$0xff]   ;;  %vm432_vm0 = vcmask 1041409   ;;  %vm434_vm1 = vcmask 1042434   ;;  %vm436_vm2 = vcmask 1043459  }
  0x28   : > { %v747_v2 = vld [vmem:[%s1091_s9 + $0x10] sm:$0xff]   ;;  %v711_v3 = vunpack.c.l.bf16 %v710_v0  ;;  %v712_v4 = vunpack.c.h.bf16 %v710_v0  ;;  %v715_v5 = vunpack.c.l.bf16 %v746_v1  ;;  %v716_v6 = vunpack.c.h.bf16 %v746_v1  ;;  %v748_v7 = vld [vmem:[%s1091_s9 + $0x18] sm:$0xff]   ;;  %v749_v52 = vld [vmem:[%s1091_s9 + $0x20] sm:$0xff]   ;;  %s708_s24 = sshll.u32 %s967_s15, 3  ;;  %s698_s11 = sshll.u32 %s1087_s6, 3 }
  0x29   : > { %v719_v8 = vunpack.c.l.bf16 %v747_v2  ;;  %v720_v9 = vunpack.c.h.bf16 %v747_v2  ;;  %v723_v10 = vunpack.c.l.bf16 %v748_v7  ;;  %v724_v11 = vunpack.c.h.bf16 %v748_v7  ;;  %v750_v53 = vld [vmem:[%s1091_s9 + $0x28] sm:$0xff]   ;;  %v751_v58 = vld [vmem:[%s1091_s9 + $0x30] sm:$0xff]   ;;  %v752_v63 = vld [vmem:[%s1091_s9 + $0x38] sm:$0xff]   ;;  %s534_s21 = scalar_lea.hbm %s1178_s2, %s708_s24  ;;  %s256_s23 = scalar_lea.vmem [#allocation8], %s698_s11 }
  0x2a   : > { %v320_v12 = vrot.slane %v711_v3, 4  ;;  %v326_v13 = vrot.slane %v712_v4, 4  ;;  %v332_v14 = vrot.slane %v715_v5, 4  ;;  %v338_v15 = vrot.slane %v716_v6, 4  ;;  %s535_s29 = sshll.u32 %s256_s23, 4  ;;  %s537_s30 = sshll.u32 %s534_s21, 4  ;;  %s536_s29 = int_to_ptr.vmem [resolvable:$true] %s535_s29  ;;  %s538_s30 = int_to_ptr.hbm [resolvable:$true] %s537_s30 }
  0x2b   : > { %v344_v16 = vrot.slane %v719_v8, 4  ;;  %v350_v17 = vrot.slane %v720_v9, 4  ;;  %v356_v18 = vrot.slane %v723_v10, 4  ;;  %v362_v19 = vrot.slane %v724_v11, 4  ;;  %s512_s22 = scalar_lea.sflag [#allocation5], %s1087_s6  ;;  %s903_s4 = sshra.s32 %s538_s30, 4  ;;  %s904_s4 = int_to_ptr.hbm [resolvable:$true] %s903_s4 }
  0x2c   : > { %v321_v20 = vadd.f32 %v711_v3, %v320_v12  ;;  %v327_v21 = vadd.f32 %v712_v4, %v326_v13  ;;  %v333_v22 = vadd.f32 %v715_v5, %v332_v14  ;;  %v339_v23 = vadd.f32 %v716_v6, %v338_v15  ;;  %s905_s5 = scalar_lea.hbm %s904_s4, 8  ;;  %s909_s9 = scalar_lea.hbm %s1178_s2, 16 }
  0x2d   : > { %v345_v24 = vadd.f32 %v719_v8, %v344_v16  ;;  %v351_v25 = vadd.f32 %v720_v9, %v350_v17  ;;  %v357_v26 = vadd.f32 %v723_v10, %v356_v18  ;;  %v363_v27 = vadd.f32 %v724_v11, %v362_v19  ;;  %p906_p4 = scmp.ne.s32.totalorder %s904_s4, %s905_s5  ;;  %p910_p7 = scmp.lt.s32.totalorder %s904_s4, %s1178_s2 }
  0x2e   : > { %v322_v28 = vrot.slane %v321_v20, 2  ;;  %v328_v29 = vrot.slane %v327_v21, 2  ;;  %v334_v30 = vrot.slane %v333_v22, 2  ;;  %v340_v31 = vrot.slane %v339_v23, 2  ;;  %p911_p8 = scmp.lt.s32.totalorder %s909_s9, %s905_s5 }
  0x2f   : > { %vm438_vm3 = vcmask 1044484   ;;  %v346_v32 = vrot.slane %v345_v24, 2  ;;  %v352_v33 = vrot.slane %v351_v25, 2  ;;  %v358_v34 = vrot.slane %v357_v26, 2  ;;  %p907_p5 = pnand %p906_p4, %p1052_p9 }
  0x30   : > { %v364_v35 = vrot.slane %v363_v27, 2  ;;  %vm440_vm4 = vcmask 1045509   ;;  %v323_v36 = vadd.f32 %v322_v28, %v321_v20  ;;  %v329_v37 = vadd.f32 %v328_v29, %v327_v21  ;;  %p912_p10 = por %p911_p8, %p910_p7 }
  0x31   : > { %v335_v38 = vadd.f32 %v334_v30, %v333_v22  ;;  %v341_v39 = vadd.f32 %v340_v31, %v339_v23  ;;  %vm442_vm5 = vcmask 1046534   ;;  %v347_v40 = vadd.f32 %v346_v32, %v345_v24  ;;  %p908_p6 = pneg %p907_p5 }
  0x32   : > { %v353_v41 = vadd.f32 %v352_v33, %v351_v25  ;;  %v359_v42 = vadd.f32 %v358_v34, %v357_v26  ;;  %v365_v43 = vadd.f32 %v364_v35, %v363_v27  ;;  %vm444_vm6 = vcmask 1047559  }
  0x33   : > { %v324_v44 = vrot.slane %v323_v36, 1  ;;  %v330_v45 = vrot.slane %v329_v37, 1  ;;  %v336_v46 = vrot.slane %v335_v38, 1  ;;  %v342_v47 = vrot.slane %v341_v39, 1  ;;  %p913_p13 = pnand %p912_p10, %p908_p6 }
  0x34   : > { %v348_v48 = vrot.slane %v347_v40, 1  ;;  %v354_v49 = vrot.slane %v353_v41, 1  ;;  %v360_v50 = vrot.slane %v359_v42, 1  ;;  %v366_v51 = vrot.slane %v365_v43, 1 }
  0x35   : > { %v325_v54 = vadd.f32 %v324_v44, %v323_v36  ;;  %v331_v55 = vadd.f32 %v330_v45, %v329_v37  ;;  %v337_v56 = vadd.f32 %v336_v46, %v335_v38  ;;  %v343_v57 = vadd.f32 %v342_v47, %v341_v39 }
  0x36   : > { %v349_v59 = vadd.f32 %v348_v48, %v347_v40  ;;  %v355_v60 = vadd.f32 %v354_v49, %v353_v41  ;;  %v361_v61 = vadd.f32 %v360_v50, %v359_v42  ;;  %v367_v62 = vadd.f32 %v366_v51, %v365_v43 }
  0x37   : > { %v433_v0 = vsel %vm432_vm0, %v331_v55, %v325_v54  ;;  %v727_v1 = vunpack.c.l.bf16 %v749_v52  ;;  %v728_v2 = vunpack.c.h.bf16 %v749_v52  ;;  %v731_v3 = vunpack.c.l.bf16 %v750_v53 }
  0x38   : > { %v435_v4 = vsel %vm434_vm1, %v337_v56, %v433_v0  ;;  %v732_v5 = vunpack.c.h.bf16 %v750_v53  ;;  %v735_v6 = vunpack.c.l.bf16 %v751_v58  ;;  %v736_v7 = vunpack.c.h.bf16 %v751_v58 }
  0x39   : > { %v437_v8 = vsel %vm436_vm2, %v343_v57, %v435_v4  ;;  %v739_v9 = vunpack.c.l.bf16 %v752_v63  ;;  %v740_v10 = vunpack.c.h.bf16 %v752_v63  ;;  %v368_v11 = vrot.slane %v727_v1, 4 }
  0x3a   : > { %v439_v12 = vsel %vm438_vm3, %v349_v59, %v437_v8  ;;  %v374_v13 = vrot.slane %v728_v2, 4  ;;  %v380_v14 = vrot.slane %v731_v3, 4  ;;  %v386_v15 = vrot.slane %v732_v5, 4 }
  0x3b   : > { %v441_v16 = vsel %vm440_vm4, %v355_v60, %v439_v12  ;;  %v369_v17 = vadd.f32 %v727_v1, %v368_v11  ;;  %v392_v18 = vrot.slane %v735_v6, 4  ;;  %v398_v19 = vrot.slane %v736_v7, 4 }
  0x3c   : > { %v443_v20 = vsel %vm442_vm5, %v361_v61, %v441_v16  ;;  %v375_v21 = vadd.f32 %v728_v2, %v374_v13  ;;  %v381_v22 = vadd.f32 %v731_v3, %v380_v14  ;;  %v387_v23 = vadd.f32 %v732_v5, %v386_v15 }
  0x3d   : > { %v1118_v24 = vsel %vm444_vm6, %v367_v62, %v443_v20  ;;  %v370_v25 = vrot.slane %v369_v17, 2  ;;  %v393_v26 = vadd.f32 %v735_v6, %v392_v18  ;;  %v399_v27 = vadd.f32 %v736_v7, %v398_v19  ;;  %v824_v18 = vld [vmem:[%s231_s10] ss:$0 sm:$0xff] }
  0x3e   : > { %v464_v28 = vmul.f32 %v1118_v24, %v1118_v24  ;;  %v376_v29 = vrot.slane %v375_v21, 2  ;;  %v382_v30 = vrot.slane %v381_v22, 2  ;;  %v388_v31 = vrot.slane %v387_v23, 2 }
  0x3f   : > { %v371_v32 = vadd.f32 %v370_v25, %v369_v17  ;;  %v394_v33 = vrot.slane %v393_v26, 2  ;;  %v400_v34 = vrot.slane %v399_v27, 2  ;;  %v404_v35 = vrot.slane %v739_v9, 4 }
  0x40   : > { %466 = vadd.xlane.f32.xlu0 %v464_v28  ;;  %v377_v36 = vadd.f32 %v376_v29, %v375_v21  ;;  %v383_v37 = vadd.f32 %v382_v30, %v381_v22  ;;  %v389_v38 = vadd.f32 %v388_v31, %v387_v23  ;;  %v410_v39 = vrot.slane %v740_v10, 4 }
  0x41   : > { %v372_v40 = vrot.slane %v371_v32, 1  ;;  %v395_v41 = vadd.f32 %v394_v33, %v393_v26  ;;  %v401_v42 = vadd.f32 %v400_v34, %v399_v27  ;;  %v405_v43 = vadd.f32 %v739_v9, %v404_v35 }
  0x42   : > { %v378_v44 = vrot.slane %v377_v36, 1  ;;  %v384_v45 = vrot.slane %v383_v37, 1  ;;  %v390_v46 = vrot.slane %v389_v38, 1  ;;  %v411_v47 = vadd.f32 %v740_v10, %v410_v39 }
  0x43   : > { %v373_v48 = vadd.f32 %v372_v40, %v371_v32  ;;  %v396_v49 = vrot.slane %v395_v41, 1  ;;  %v402_v50 = vrot.slane %v401_v42, 1  ;;  %v406_v51 = vrot.slane %v405_v43, 2 }
  0x44   : > { %v379_v52 = vadd.f32 %v378_v44, %v377_v36  ;;  %v385_v53 = vadd.f32 %v384_v45, %v383_v37  ;;  %v391_v54 = vadd.f32 %v390_v46, %v389_v38  ;;  %v412_v55 = vrot.slane %v411_v47, 2 }
  0x45   : > { %v397_v56 = vadd.f32 %v396_v49, %v395_v41  ;;  %v407_v57 = vadd.f32 %v406_v51, %v405_v43  ;;  %v403_v58 = vadd.f32 %v402_v50, %v401_v42 }
  0x46   : > { %v413_v59 = vadd.f32 %v412_v55, %v411_v47  ;;  %v446_v60 = vsel %vm432_vm0, %v379_v52, %v373_v48 }
  0x47   : > { %v408_v61 = vrot.slane %v407_v57, 1  ;;  %v447_v62 = vsel %vm434_vm1, %v385_v53, %v446_v60 }
  0x48   : > { %v414_v63 = vrot.slane %v413_v59, 1  ;;  %v448_v0 = vsel %vm436_vm2, %v391_v54, %v447_v62 }
  0x49   : > { %v409_v1 = vadd.f32 %v408_v61, %v407_v57  ;;  %v449_v2 = vsel %vm438_vm3, %v397_v56, %v448_v0 }
  0x4a   : > { %v415_v3 = vadd.f32 %v414_v63, %v413_v59  ;;  %v450_v4 = vsel %vm440_vm4, %v403_v58, %v449_v2 }
  0x4b   : > { %v451_v5 = vsel %vm442_vm5, %v409_v1, %v450_v4 }
  0x4c   : > { %v452_v6 = vsel %vm444_vm6, %v415_v3, %v451_v5 }
  0x4d   : > { %v465_v7 = vmul.f32 %v452_v6, %v452_v6 }
  0x4f   : > { %468 = vadd.xlane.f32.xlu0 %v465_v7 }
  0xb3   : > { %v467_v8 = vpop.xlane.xlu0 %466 }
  0xb4   : > { %v470_v9 = vadd.f32 1e-12, %v467_v8 }
  0xb6   : > { %825 = vrsqrt.f32 %v470_v9  ;;  %vm478_vm8 = vweird.f32 %v470_v9 }
  0xbc   : > { %v826_v10 = vpop.eup %825 }
  0xbd   : > { %v473_v11 = vmul.f32 %v826_v10, %v470_v9  ;;  %vm479_vm7 = vweird.f32 %v826_v10 }
  0xbe   : > { %vm480_vm9 = vmor %vm478_vm8, %vm479_vm7 }
  0xbf   : > { %v474_v12 = vmul.f32 %v826_v10, %v473_v11 }
  0xc1   : > { %v475_v13 = vmul.f32 0.5, %v474_v12 }
  0xc2   : > { %v469_v14 = vpop.xlane.xlu0 %468 }
  0xc3   : > { %v476_v15 = vsub.f32 1.5, %v475_v13  ;;  %v471_v16 = vadd.f32 1e-12, %v469_v14 }
  0xc5   : > { %827 = vrsqrt.f32 %v471_v16  ;;  %v477_v17 = vmul.f32 %v826_v10, %v476_v15  ;;  %vm488_vm11 = vweird.f32 %v471_v16 }
  0xc7   : > { %v481_v19 = vsel %vm480_vm9, %v826_v10, %v477_v17 }
  0xc8   : > { %v492_v20 = vmul.f32 %v481_v19, %v1118_v24 }
  0xca   : > { %v502_v21 = vmul.f32 %v824_v18, %v492_v20 }
  0xcb   : > { %v828_v22 = vpop.eup %827 }
  0xcc   : > { %v483_v23 = vmul.f32 %v828_v22, %v471_v16  ;;  %504 = vadd.xlane.f32.xlu1 %v502_v21  ;;  %vm489_vm10 = vweird.f32 %v828_v22 }
  0xcd   : > { %vm490_vm12 = vmor %vm488_vm11, %vm489_vm10 }
  0xce   : > { %v484_v25 = vmul.f32 %v828_v22, %v483_v23 }
  0xd0   : > { %v485_v26 = vmul.f32 0.5, %v484_v25 }
  0xd2   : > { %v486_v27 = vsub.f32 1.5, %v485_v26 }
  0xd4   : > { %v487_v28 = vmul.f32 %v828_v22, %v486_v27 }
  0xd6   : > { %v491_v24 = vsel %vm490_vm12, %v828_v22, %v487_v28 }
  0xd7   : > { %v493_v29 = vmul.f32 %v491_v24, %v452_v6 }
  0xd9   : > { %v503_v30 = vmul.f32 %v824_v18, %v493_v29  ;;  %v744_v31 = vpack.c.bf16 %v493_v29, %v492_v20 }
  0xdb   : > { %506 = vadd.xlane.f32.xlu1 %v503_v30  ;;  %745 = vst [vmem:[%s256_s23] sm:$0xff] %v744_v31  }
  0xdc   : > { %916 = shalt.err (!%p913_p13)
}
  0xdd   : > { %s979_s6 = smov 64   ;;  %s980_s24 = smov 4   ;;  %vm508_vm13 = vcmask 7168  }
  0xde   : > { %757 = dma.vmem_to_hbm [thread:$0]  (%p1052_p9), %s536_s29, 128, %s538_s30, %s512_s22, %s979_s6, %s979_s6, %s980_s24  }
  0xdf   : > { %p271_p0 = scmp.lt.s32.totalorder %s967_s15, 1 }
  0xe1   : > { %s1193_s15 = smov (!%p271_p0, %s967_s15), 1 }
  0xe2   : > { %s707_s11 = sshll.u32 %s1193_s15, 4 }
  0xe3   : > { %s278_s21 = scalar_lea.vmem %s1179_s3, %s707_s11 }
 0x13f   : > { %v505_v32 = vpop.xlane.xlu1 %504 }
 0x140   : > { %509 = vst.msk [vmem:[%s278_s21] sm:$0xff] %vm508_vm13, %v505_v32 }
 0x14e   : > { %v507_v33 = vpop.xlane.xlu1 %506 }
 0x14f   : > { %510 = vst.msk [vmem:[%s278_s21 + $0x8] sm:$0xff] %vm508_vm13, %v507_v33 }
 0x150 PF: > { %s556_s23 = sand.u32 1, %s955_s12   ;;  %p767_p9 = pnand %p692_p12, %p1059_p11 }
 0x151   : > { %s557_s25 = scalar_lea.sflag [#allocation5], %s556_s23 }
 0x152   : > { %p768_p1 = pneg %p767_p9 }
 0x154   : > { %950 = dma.done.wait (%p768_p1), %s557_s25, 128  }
 0x155   : > { %952 = vsyncadd (%p768_p1), %s557_s25, 4294967168  ;;  %s23_s17 = sadd.s32 1, %s975_s17   ;;  %s1185_s12 = smov %s959_s13 }
 0x156   : > { %p20_p2 = scmp.ge.s32.totalorder %s23_s17, 4   ;;  %s1186_s13 = smov %s963_s14 }
 0x157   : > { %s1187_s14 = smov %s1057_s26  ;;  %s1188_s15 = smov %s971_s16 }
 0x158   : > { %s1189_s16 = smov %s1191_s20  ;;  %22 = sbr.rel (!%p20_p2) target bundleno = 8 (0x8), region = 106 }
 0x15d   :  { %575 = vsyncpa [#allocation4], 1 }
 0x15e   :  { %577 = vsyncpa [#allocation4 + $0x1], 1 }
 0x15f   :  { %578 = vsyncpa [#allocation7], 1 }
 0x160   :  { %580 = vsyncpa [#allocation7 + $0x1], 1 }
 0x161   :  { %581 = vsyncpa [#allocation5], 1 }
 0x162   :  { %583 = vsyncpa [#allocation5 + $0x1], 1 }

</bundles_post_ra>
